<compile_context>
chip_gen: v7x
topology: tpu7x:2x2x1
jax: 0.10.0
libtpu: 0.0.40
codegen_flags: <defaults>
</compile_context>

<pallas_src>
import functools
import math

import jax
import jax.numpy as jnp
from jax import lax
from jax.experimental import pallas as pl
from jax.experimental.pallas import tpu as pltpu

DROPOUT_RATE = 0.2
_KEEP_SCALE = 1.0 / (1.0 - DROPOUT_RATE)
_DROP_THRESH_24 = int(round(DROPOUT_RATE * (1 << 24)))  # threshold on 24 random bits

# Hash constants as signed int32 (two's-complement wrap of 0x9E3779B1 / 0x85EBCA6B / 0xC2B2AE35).
_H_SEED_MIX = -1640531535
_H_C1 = -2048990701
_H_C2 = -1028477387


def _round_up(x, m):
    return ((x + m - 1) // m) * m


def _erf_f32(x):
    """erf via Abramowitz & Stegun 7.1.26 (max abs error ~1.5e-7, f32-adequate)."""
    a1 = jnp.float32(0.254829592)
    a2 = jnp.float32(-0.284496736)
    a3 = jnp.float32(1.421413741)
    a4 = jnp.float32(-1.453152027)
    a5 = jnp.float32(1.061405429)
    p = jnp.float32(0.3275911)
    sgn = jnp.where(x >= 0, jnp.float32(1.0), jnp.float32(-1.0))
    ax = jnp.abs(x)
    t = jnp.float32(1.0) / (jnp.float32(1.0) + p * ax)
    poly = ((((a5 * t + a4) * t + a3) * t + a2) * t + a1) * t
    return sgn * (jnp.float32(1.0) - poly * jnp.exp(-ax * ax))


def _ffn_kernel(seed_ref, x_ref, w1_ref, b1_ref, w2_ref, b2_ref, o_ref,
                *, training, tile_m, d_ff_p):
    i = pl.program_id(0)

    x = x_ref[...]                                                # (tile_m, d_model_p) bf16
    # fully_connected_1 on the MXU: bf16 inputs, f32 accumulate.
    h = jnp.dot(x, w1_ref[...], preferred_element_type=jnp.float32) + b1_ref[...]

    # torch.nn.GELU() default = exact (erf) variant, computed in f32.
    h = jnp.float32(0.5) * h * (jnp.float32(1.0) + _erf_f32(h * jnp.float32(1.0 / math.sqrt(2.0))))

    if training:
        # Dropout (training semantics): Bernoulli keep-mask, scale by 1/(1-p).
        # Counter-based hash on the global element index -> unique mask per tile,
        # deterministic in `seed`, no TPU-only PRNG primitives needed.
        rows = lax.broadcasted_iota(jnp.int32, h.shape, 0) + i * jnp.int32(tile_m)
        cols = lax.broadcasted_iota(jnp.int32, h.shape, 1)
        z = rows * jnp.int32(d_ff_p) + cols
        z = z + seed_ref[0] * jnp.int32(_H_SEED_MIX)
        z = z ^ lax.shift_right_logical(z, jnp.int32(16))
        z = z * jnp.int32(_H_C1)
        z = z ^ lax.shift_right_logical(z, jnp.int32(13))
        z = z * jnp.int32(_H_C2)
        z = z ^ lax.shift_right_logical(z, jnp.int32(16))
        keep = (z & jnp.int32(0x00FFFFFF)) >= jnp.int32(_DROP_THRESH_24)   # integer compare only
        h = jnp.where(keep, h * jnp.float32(_KEEP_SCALE), jnp.float32(0.0))

    # fully_connected_2: bf16 MXU inputs, f32 accumulate + f32 bias.
    o_ref[...] = (jnp.dot(h.astype(jnp.bfloat16), w2_ref[...],
                          preferred_element_type=jnp.float32)
                  + b2_ref[...]).astype(o_ref.dtype)


def feed_forward(x, params, *, seed=0, training=True, tile_m=256, vmem_limit_bytes=None):
    """Pallas TPU implementation of FeedForward.forward(x, validate)."""
    w1, b1, w2, b2 = params
    d_model = x.shape[-1]
    d_ff = w1.shape[1]
    lead = x.shape[:-1]
    M = int(math.prod(lead)) if lead else 1

    # Lane-dense padding (multiples of 128 on the last axes); padded rows/cols are zero
    # and are sliced off below, so they do not change the result.
    d_model_p = _round_up(d_model, 128)
    d_ff_p = _round_up(d_ff, 128)

    # Pick TILE_M: multiple of 8, no bigger than needed, shrunk against a conservative
    # VMEM budget (fits v7x's 64 MiB; v5e/v6e have more headroom).
    tile_m = max(8, min(int(tile_m), _round_up(M, 8)))
    weight_bytes = 2 * 2 * (d_model_p * d_ff_p + d_ff_p * d_model_p)  # bf16, double-buffered

    def _work_bytes(tm):
        return (2 * tm * d_model_p * 2      # x tiles (bf16, double-buffered)
                + 2 * tm * d_model_p * 4    # out tiles (f32, double-buffered)
                + 2 * tm * d_ff_p * 4)      # f32 intermediate h + slack

    budget = 48 << 20
    while tile_m > 8 and weight_bytes + _work_bytes(tile_m) > budget:
        tile_m //= 2
    tile_m = max(8, _round_up(tile_m, 8))

    M_p = _round_up(M, tile_m)
    grid_m = M_p // tile_m

    x2 = x.reshape(M, d_model)
    x_p = jnp.zeros((M_p, d_model_p), jnp.bfloat16).at[:M, :d_model].set(x2.astype(jnp.bfloat16))
    w1_p = jnp.zeros((d_model_p, d_ff_p), jnp.bfloat16).at[:d_model, :d_ff].set(w1.astype(jnp.bfloat16))
    b1_p = jnp.zeros((1, d_ff_p), jnp.float32).at[0, :d_ff].set(b1.astype(jnp.float32))
    w2_p = jnp.zeros((d_ff_p, d_model_p), jnp.bfloat16).at[:d_ff, :d_model].set(w2.astype(jnp.bfloat16))
    b2_p = jnp.zeros((1, d_model_p), jnp.float32).at[0, :d_model].set(b2.astype(jnp.float32))
    seed_arr = jnp.array([seed], dtype=jnp.int32)

    if vmem_limit_bytes is None:
        est = weight_bytes + _work_bytes(tile_m) + 2 * (d_ff_p + d_model_p) * 4
        vmem_limit_bytes = int(min(max(2 * est, 4 << 20), 64 << 20))

    flops = 4 * M_p * d_model_p * d_ff_p                       # two matmuls
    bytes_accessed = (x_p.size * 2 + w1_p.size * 2 + w2_p.size * 2
                      + (b1_p.size + b2_p.size) * 4 + M_p * d_model_p * 4)

    out_p = pl.pallas_call(
        functools.partial(_ffn_kernel, training=training, tile_m=tile_m, d_ff_p=d_ff_p),
        out_shape=jax.ShapeDtypeStruct((M_p, d_model_p), jnp.float32),
        grid_spec=pltpu.PrefetchScalarGridSpec(
            num_scalar_prefetch=1,
            grid=(grid_m,),
            in_specs=[
                pl.BlockSpec((tile_m, d_model_p), lambda i, s: (i, 0)),   # x tile (pipelined)
                pl.BlockSpec((d_model_p, d_ff_p), lambda i, s: (0, 0)),   # w1 (VMEM-resident)
                pl.BlockSpec((1, d_ff_p), lambda i, s: (0, 0)),           # b1
                pl.BlockSpec((d_ff_p, d_model_p), lambda i, s: (0, 0)),   # w2 (VMEM-resident)
                pl.BlockSpec((1, d_model_p), lambda i, s: (0, 0)),        # b2
            ],
            out_specs=pl.BlockSpec((tile_m, d_model_p), lambda i, s: (i, 0)),
        ),
        compiler_params=pltpu.CompilerParams(
            dimension_semantics=("parallel",),
            vmem_limit_bytes=vmem_limit_bytes),
        cost_estimate=pl.CostEstimate(
            flops=flops,
            transcendentals=M_p * d_ff_p,
            bytes_accessed=bytes_accessed),
    )(seed_arr, x_p, w1_p, b1_p, w2_p, b2_p)

    return out_p[:M, :d_model].reshape(x.shape)


def init_feed_forward_params(key, d_model, d_ff):
    """Deterministic init matching torch.nn.Linear's default (uniform +/- 1/sqrt(fan_in)).
    Weights are stored already transposed (in_features, out_features) so the kernel
    computes x @ W directly."""
    k1, k2, k3, k4 = jax.random.split(key, 4)
    bound1 = 1.0 / math.sqrt(d_model)
    bound2 = 1.0 / math.sqrt(d_ff)
    w1 = jax.random.uniform(k1, (d_model, d_ff), jnp.float32, -bound1, bound1)
    b1 = jax.random.uniform(k2, (d_ff,), jnp.float32, -bound1, bound1)
    w2 = jax.random.uniform(k3, (d_ff, d_model), jnp.float32, -bound2, bound2)
    b2 = jax.random.uniform(k4, (d_model,), jnp.float32, -bound2, bound2)
    return w1, b1, w2, b2


if __name__ == "__main__":
    key = jax.random.PRNGKey(0)
    k_x, k_p = jax.random.split(key)

    batch, seq, d_model, d_ff = 2, 8, 32, 64
    x = jax.random.normal(k_x, (batch, seq, d_model), dtype=jnp.float32)
    params = init_feed_forward_params(k_p, d_model, d_ff)

    # Training path (dropout active, deterministic seed).
    out = feed_forward(x, params, seed=0, training=True)
    jax.block_until_ready(out)
    assert out.shape == x.shape

    # Eval path (dropout off) + sanity check against a pure-JAX f32 reference.
    out_eval = feed_forward(x, params, training=False)
    jax.block_until_ready(out_eval)
    assert out_eval.shape == x.shape

    w1, b1, w2, b2 = params
    ref = jax.nn.gelu(x.astype(jnp.float32) @ w1 + b1, approximate=False) @ w2 + b2
    # bf16 MXU inputs -> loose tolerance vs the f32 reference.
    assert jnp.allclose(out_eval, ref, atol=1e-1, rtol=1e-1), \
        float(jnp.max(jnp.abs(out_eval - ref)))

    print("KERNEL_OK")
</pallas_src>

<mosaic_0001>
module attributes {stable_mosaic.version = 11 : i64} {
  func.func @_ffn_kernel(%arg0: i32, %arg1: memref<1xi32, #tpu.memory_space<smem>>, %arg2: memref<16x128xbf16, #tpu.memory_space<vmem>>, %arg3: memref<128x128xbf16, #tpu.memory_space<vmem>>, %arg4: memref<1x128xf32, #tpu.memory_space<vmem>>, %arg5: memref<128x128xbf16, #tpu.memory_space<vmem>>, %arg6: memref<1x128xf32, #tpu.memory_space<vmem>>, %arg7: memref<16x128xf32, #tpu.memory_space<vmem>>) attributes {dimension_semantics = [#tpu.dimension_semantics<parallel>], iteration_bounds = array<i64: 1>, scalar_prefetch = 1 : i64, scratch_operands = 0 : i64, tpu.core_type = #tpu.core_type<tc>, window_params = [{transform_indices = @transform_0, window_bounds = array<i64: 16, 128>}, {pipeline_mode = #tpu.pipeline_mode<synchronous>, transform_indices = @transform_1, window_bounds = array<i64: 128, 128>}, {pipeline_mode = #tpu.pipeline_mode<synchronous>, transform_indices = @transform_2, window_bounds = array<i64: 1, 128>}, {pipeline_mode = #tpu.pipeline_mode<synchronous>, transform_indices = @transform_3, window_bounds = array<i64: 128, 128>}, {pipeline_mode = #tpu.pipeline_mode<synchronous>, transform_indices = @transform_4, window_bounds = array<i64: 1, 128>}, {transform_indices = @transform_5, window_bounds = array<i64: 16, 128>}]} {
    %c0 = arith.constant 0 : index
    %c0_0 = arith.constant 0 : index
    %0 = vector.load %arg2[%c0, %c0_0] : memref<16x128xbf16, #tpu.memory_space<vmem>>, vector<16x128xbf16>
    %c0_1 = arith.constant 0 : index
    %c0_2 = arith.constant 0 : index
    %1 = vector.load %arg3[%c0_1, %c0_2] : memref<128x128xbf16, #tpu.memory_space<vmem>>, vector<128x128xbf16>
    %cst = arith.constant dense<0.000000e+00> : vector<16x128xf32>
    %2 = tpu.matmul %0, %1, %cst {dimension_numbers = #tpu.dot_dimension_numbers<[1], [0], [0], [1], [0, 0, 1, 1], [], []>} : vector<16x128xbf16>, vector<128x128xbf16>, vector<16x128xf32> -> vector<16x128xf32>
    %c0_3 = arith.constant 0 : index
    %c0_4 = arith.constant 0 : index
    %3 = vector.load %arg4[%c0_3, %c0_4] : memref<1x128xf32, #tpu.memory_space<vmem>>, vector<1x128xf32>
    %4 = vector.broadcast %3 : vector<1x128xf32> to vector<16x128xf32>
    %5 = arith.addf %2, %4 : vector<16x128xf32>
    %cst_5 = arith.constant 5.000000e-01 : f32
    %6 = vector.broadcast %cst_5 : f32 to vector<16x128xf32>
    %7 = arith.mulf %6, %5 : vector<16x128xf32>
    %cst_6 = arith.constant 0.707106769 : f32
    %8 = vector.broadcast %cst_6 : f32 to vector<16x128xf32>
    %9 = arith.mulf %5, %8 : vector<16x128xf32>
    %cst_7 = arith.constant 0.000000e+00 : f32
    %10 = vector.broadcast %cst_7 : f32 to vector<16x128xf32>
    %11 = arith.cmpf oge, %9, %10 : vector<16x128xf32>
    %cst_8 = arith.constant 1.000000e+00 : f32
    %cst_9 = arith.constant -1.000000e+00 : f32
    %12 = vector.broadcast %cst_8 : f32 to vector<16x128xf32>
    %13 = vector.broadcast %cst_9 : f32 to vector<16x128xf32>
    %14 = arith.select %11, %12, %13 : vector<16x128xi1>, vector<16x128xf32>
    %15 = math.absf %9 : vector<16x128xf32>
    %cst_10 = arith.constant 0.327591091 : f32
    %16 = vector.broadcast %cst_10 : f32 to vector<16x128xf32>
    %17 = arith.mulf %16, %15 : vector<16x128xf32>
    %cst_11 = arith.constant 1.000000e+00 : f32
    %18 = vector.broadcast %cst_11 : f32 to vector<16x128xf32>
    %19 = arith.addf %18, %17 : vector<16x128xf32>
    %cst_12 = arith.constant 1.000000e+00 : f32
    %20 = vector.broadcast %cst_12 : f32 to vector<16x128xf32>
    %21 = arith.divf %20, %19 : vector<16x128xf32>
    %cst_13 = arith.constant 1.06140542 : f32
    %22 = vector.broadcast %cst_13 : f32 to vector<16x128xf32>
    %23 = arith.mulf %22, %21 : vector<16x128xf32>
    %cst_14 = arith.constant -1.45315206 : f32
    %24 = vector.broadcast %cst_14 : f32 to vector<16x128xf32>
    %25 = arith.addf %23, %24 : vector<16x128xf32>
    %26 = arith.mulf %25, %21 : vector<16x128xf32>
    %cst_15 = arith.constant 1.42141378 : f32
    %27 = vector.broadcast %cst_15 : f32 to vector<16x128xf32>
    %28 = arith.addf %26, %27 : vector<16x128xf32>
    %29 = arith.mulf %28, %21 : vector<16x128xf32>
    %cst_16 = arith.constant -0.284496725 : f32
    %30 = vector.broadcast %cst_16 : f32 to vector<16x128xf32>
    %31 = arith.addf %29, %30 : vector<16x128xf32>
    %32 = arith.mulf %31, %21 : vector<16x128xf32>
    %cst_17 = arith.constant 0.254829586 : f32
    %33 = vector.broadcast %cst_17 : f32 to vector<16x128xf32>
    %34 = arith.addf %32, %33 : vector<16x128xf32>
    %35 = arith.mulf %34, %21 : vector<16x128xf32>
    %cst_18 = arith.constant 0.000000e+00 : f32
    %36 = vector.broadcast %cst_18 : f32 to vector<16x128xf32>
    %37 = arith.subf %36, %15 : vector<16x128xf32>
    %38 = arith.mulf %37, %15 : vector<16x128xf32>
    %39 = math.exp %38 : vector<16x128xf32>
    %40 = arith.mulf %35, %39 : vector<16x128xf32>
    %cst_19 = arith.constant 1.000000e+00 : f32
    %41 = vector.broadcast %cst_19 : f32 to vector<16x128xf32>
    %42 = arith.subf %41, %40 : vector<16x128xf32>
    %43 = arith.mulf %14, %42 : vector<16x128xf32>
    %cst_20 = arith.constant 1.000000e+00 : f32
    %44 = vector.broadcast %cst_20 : f32 to vector<16x128xf32>
    %45 = arith.addf %44, %43 : vector<16x128xf32>
    %46 = arith.mulf %7, %45 : vector<16x128xf32>
    %47 = tpu.iota {dimensions = array<i32: 0>} : vector<16x128xi32>
    %c16_i32 = arith.constant 16 : i32
    %48 = arith.muli %arg0, %c16_i32 : i32
    %49 = vector.broadcast %48 : i32 to vector<16x128xi32>
    %50 = arith.addi %47, %49 : vector<16x128xi32>
    %51 = tpu.iota {dimensions = array<i32: 1>} : vector<16x128xi32>
    %c128_i32 = arith.constant 128 : i32
    %52 = vector.broadcast %c128_i32 : i32 to vector<16x128xi32>
    %53 = arith.muli %50, %52 : vector<16x128xi32>
    %54 = arith.addi %53, %51 : vector<16x128xi32>
    %c0_21 = arith.constant 0 : index
    %55 = memref.load %arg1[%c0_21] : memref<1xi32, #tpu.memory_space<smem>>
    %c-1640531535_i32 = arith.constant -1640531535 : i32
    %56 = arith.muli %55, %c-1640531535_i32 : i32
    %57 = vector.broadcast %56 : i32 to vector<16x128xi32>
    %58 = arith.addi %54, %57 : vector<16x128xi32>
    %c16_i32_22 = arith.constant 16 : i32
    %59 = vector.broadcast %c16_i32_22 : i32 to vector<16x128xi32>
    %60 = arith.shrui %58, %59 : vector<16x128xi32>
    %61 = arith.xori %58, %60 : vector<16x128xi32>
    %c-2048990701_i32 = arith.constant -2048990701 : i32
    %62 = vector.broadcast %c-2048990701_i32 : i32 to vector<16x128xi32>
    %63 = arith.muli %61, %62 : vector<16x128xi32>
    %c13_i32 = arith.constant 13 : i32
    %64 = vector.broadcast %c13_i32 : i32 to vector<16x128xi32>
    %65 = arith.shrui %63, %64 : vector<16x128xi32>
    %66 = arith.xori %63, %65 : vector<16x128xi32>
    %c-1028477387_i32 = arith.constant -1028477387 : i32
    %67 = vector.broadcast %c-1028477387_i32 : i32 to vector<16x128xi32>
    %68 = arith.muli %66, %67 : vector<16x128xi32>
    %c16_i32_23 = arith.constant 16 : i32
    %69 = vector.broadcast %c16_i32_23 : i32 to vector<16x128xi32>
    %70 = arith.shrui %68, %69 : vector<16x128xi32>
    %71 = arith.xori %68, %70 : vector<16x128xi32>
    %c16777215_i32 = arith.constant 16777215 : i32
    %72 = vector.broadcast %c16777215_i32 : i32 to vector<16x128xi32>
    %73 = arith.andi %71, %72 : vector<16x128xi32>
    %c3355443_i32 = arith.constant 3355443 : i32
    %74 = vector.broadcast %c3355443_i32 : i32 to vector<16x128xi32>
    %75 = arith.cmpi sge, %73, %74 : vector<16x128xi32>
    %cst_24 = arith.constant 1.250000e+00 : f32
    %76 = vector.broadcast %cst_24 : f32 to vector<16x128xf32>
    %77 = arith.mulf %46, %76 : vector<16x128xf32>
    %cst_25 = arith.constant 0.000000e+00 : f32
    %78 = vector.broadcast %cst_25 : f32 to vector<16x128xf32>
    %79 = arith.select %75, %77, %78 : vector<16x128xi1>, vector<16x128xf32>
    %80 = arith.truncf %79 : vector<16x128xf32> to vector<16x128xbf16>
    %c0_26 = arith.constant 0 : index
    %c0_27 = arith.constant 0 : index
    %81 = vector.load %arg5[%c0_26, %c0_27] : memref<128x128xbf16, #tpu.memory_space<vmem>>, vector<128x128xbf16>
    %cst_28 = arith.constant dense<0.000000e+00> : vector<16x128xf32>
    %82 = tpu.matmul %80, %81, %cst_28 {dimension_numbers = #tpu.dot_dimension_numbers<[1], [0], [0], [1], [0, 0, 1, 1], [], []>} : vector<16x128xbf16>, vector<128x128xbf16>, vector<16x128xf32> -> vector<16x128xf32>
    %c0_29 = arith.constant 0 : index
    %c0_30 = arith.constant 0 : index
    %83 = vector.load %arg6[%c0_29, %c0_30] : memref<1x128xf32, #tpu.memory_space<vmem>>, vector<1x128xf32>
    %84 = vector.broadcast %83 : vector<1x128xf32> to vector<16x128xf32>
    %85 = arith.addf %82, %84 : vector<16x128xf32>
    %c0_31 = arith.constant 0 : index
    %c0_32 = arith.constant 0 : index
    %86 = vector.load %arg7[%c0_31, %c0_32] : memref<16x128xf32, #tpu.memory_space<vmem>>, vector<16x128xf32>
    tpu.vector_store %arg7[%c0_31, %c0_32], %85 {strides = array<i32>} : memref<16x128xf32, #tpu.memory_space<vmem>>, vector<16x128xf32>,
    return
  }
  func.func @transform_0(%arg0: i32, %arg1: memref<1xi32, #tpu.memory_space<smem>>) -> (i32, i32) {
    %c0_i32 = arith.constant 0 : i32
    %c0_i32_0 = arith.constant 0 : i32
    return %arg0, %c0_i32 : i32, i32
  }
  func.func @transform_1(%arg0: i32, %arg1: memref<1xi32, #tpu.memory_space<smem>>) -> (i32, i32) {
    %c0_i32 = arith.constant 0 : i32
    %c0_i32_0 = arith.constant 0 : i32
    %c0_i32_1 = arith.constant 0 : i32
    return %c0_i32, %c0_i32_0 : i32, i32
  }
  func.func @transform_2(%arg0: i32, %arg1: memref<1xi32, #tpu.memory_space<smem>>) -> (i32, i32) {
    %c0_i32 = arith.constant 0 : i32
    %c0_i32_0 = arith.constant 0 : i32
    %c0_i32_1 = arith.constant 0 : i32
    return %c0_i32, %c0_i32_0 : i32, i32
  }
  func.func @transform_3(%arg0: i32, %arg1: memref<1xi32, #tpu.memory_space<smem>>) -> (i32, i32) {
    %c0_i32 = arith.constant 0 : i32
    %c0_i32_0 = arith.constant 0 : i32
    %c0_i32_1 = arith.constant 0 : i32
    return %c0_i32, %c0_i32_0 : i32, i32
  }
  func.func @transform_4(%arg0: i32, %arg1: memref<1xi32, #tpu.memory_space<smem>>) -> (i32, i32) {
    %c0_i32 = arith.constant 0 : i32
    %c0_i32_0 = arith.constant 0 : i32
    %c0_i32_1 = arith.constant 0 : i32
    return %c0_i32, %c0_i32_0 : i32, i32
  }
  func.func @transform_5(%arg0: i32, %arg1: memref<1xi32, #tpu.memory_space<smem>>) -> (i32, i32) {
    %c0_i32 = arith.constant 0 : i32
    %c0_i32_0 = arith.constant 0 : i32
    return %arg0, %c0_i32 : i32, i32
  }
}

</mosaic_0001>

<bundles_post_ra>
// kernel: tpu_custom_call.1
= control target key start
LH: loop header
LB: loop body
LE: loop exit
PB: predicated region body
PF: predicated region fallthrough
CT: control target
= control target key end

     0   :  { %12 = vsyncpa [#allocation5], 0  ;;  %s759_s0 = inlined_call_operand.<no memory space> [shape: s32[1], index: 0, kind: input, shape index: {}]   ;;  %s760_s1 = inlined_call_operand.hbm [shape: bf16[16,128], index: 1, kind: input, shape index: {}]   ;;  %s761_s2 = inlined_call_operand.hbm [shape: bf16[128,128], index: 2, kind: input, shape index: {}]   ;;  %s762_s3 = inlined_call_operand.vmem [shape: f32[1,128], index: 3, kind: input, shape index: {}]   ;;  %s763_s4 = inlined_call_operand.hbm [shape: bf16[128,128], index: 4, kind: input, shape index: {}]   ;;  %s764_s5 = inlined_call_operand.vmem [shape: f32[1,128], index: 5, kind: input, shape index: {}]   ;;  %s765_s6 = inlined_call_operand.hbm [shape: f32[16,128], index: 6, kind: output, shape index: {}]  }
   0x1   :  { %13 = vsyncpa [#allocation8], 0 }
   0x2   :  { %14 = vsyncpa [#allocation6], 0  ;;  %s624_s21 = smov [#allocation7]   ;;  %s625_s23 = smov [#allocation4]  }
   0x3   :  { %s32_s22 = sshll.u32 %s624_s21, 4  ;;  %s20_s24 = sshll.u32 %s625_s23, 4  ;;  %s33_s22 = int_to_ptr.vmem [resolvable:$true] %s32_s22  ;;  %s670_s24 = int_to_ptr.vmem [resolvable:$true] %s20_s24 }
   0x4   :  { %s530_s27 = scalar_lea.hbm %s761_s2, 1024 }
   0x5   :  { %p531_p0 = scmp.ne.s32.totalorder %s761_s2, %s530_s27  ;;  %p534_p1 = scmp.lt.u32.totalorder %s530_s27, %s761_s2 }
   0x7   :  { %p536_p2 = pnand %p534_p1, %p531_p0 }
   0x9   :  { %539 = shalt.err (!%p536_p2)
}
   0xa   :  { %s540_s8 = scalar_lea.vmem %s33_s22, 1024  ;;  %p545_p4 = scmp.lt.s32.totalorder %s33_s22, %s33_s22 }
   0xb   :  { %p541_p3 = scmp.ne.s32.totalorder %s33_s22, %s540_s8  ;;  %p546_p5 = scmp.lt.s32.totalorder %s540_s8, %s540_s8 }
   0xd   :  { %p547_p6 = por %p546_p5, %p545_p4 }
   0xf   :  { %p548_p7 = pnand %p547_p6, %p541_p3 }
  0x11   :  { %551 = shalt.err (!%p548_p7)
}
  0x12   :  { %s626_s9 = smov 64   ;;  %s627_s10 = smov 4  }
  0x13   :  { %38 = dma.hbm_to_vmem [thread:$0]  %s761_s2, 1024, %s33_s22, [#allocation8], %s626_s9, %s626_s9, %s627_s10  }
  0x14   :  { %s552_s15 = scalar_lea.hbm %s760_s1, 128 }
  0x15   :  { %p553_p8 = scmp.ne.s32.totalorder %s760_s1, %s552_s15  ;;  %p556_p9 = scmp.lt.u32.totalorder %s552_s15, %s760_s1 }
  0x17   :  { %p558_p10 = pnand %p556_p9, %p553_p8 }
  0x19   :  { %561 = shalt.err (!%p558_p10)
}
  0x1a   :  { %s562_s20 = scalar_lea.vmem %s670_s24, 128  ;;  %p567_p12 = scmp.lt.s32.totalorder %s670_s24, %s670_s24 }
  0x1b   :  { %p563_p11 = scmp.ne.s32.totalorder %s670_s24, %s562_s20  ;;  %p568_p13 = scmp.lt.s32.totalorder %s562_s20, %s562_s20 }
  0x1d   :  { %p569_p0 = por %p568_p13, %p567_p12 }
  0x1f   :  { %p570_p1 = pnand %p569_p0, %p563_p11 }
  0x21   :  { %573 = shalt.err (!%p570_p1)
}
  0x22   :  { %26 = dma.hbm_to_vmem [thread:$0]  %s760_s1, 128, %s670_s24, [#allocation5], %s626_s9, %s626_s9, %s627_s10  }
  0x23   :  { %s628_s22 = smov [#allocation9]   ;;  %s574_s27 = scalar_lea.hbm %s763_s4, 1024 }
  0x24   :  { %s46_s23 = sshll.u32 %s628_s22, 4  ;;  %p575_p2 = scmp.ne.s32.totalorder %s763_s4, %s574_s27  ;;  %s47_s23 = int_to_ptr.vmem [resolvable:$true] %s46_s23 }
  0x25   :  { %p578_p3 = scmp.lt.u32.totalorder %s574_s27, %s763_s4 }
  0x27   :  { %p580_p4 = pnand %p578_p3, %p575_p2 }
  0x29   :  { %583 = shalt.err (!%p580_p4)
}
  0x2a   :  { %s584_s8 = scalar_lea.vmem %s47_s23, 1024  ;;  %p589_p6 = scmp.lt.s32.totalorder %s47_s23, %s47_s23 }
  0x2b   :  { %p585_p5 = scmp.ne.s32.totalorder %s47_s23, %s584_s8  ;;  %p590_p7 = scmp.lt.s32.totalorder %s584_s8, %s584_s8 }
  0x2d   :  { %p591_p8 = por %p590_p7, %p589_p6 }
  0x2f   :  { %p592_p9 = pnand %p591_p8, %p585_p5 }
  0x31   :  { %595 = shalt.err (!%p592_p9)
}
  0x32   :  { %52 = dma.hbm_to_vmem [thread:$0]  %s763_s4, 1024, %s47_s23, [#allocation8], %s626_s9, %s626_s9, %s627_s10  }
  0x33   :  { %618 = dma.done.wait [#allocation5], 128  }
  0x34   :  { %619 = vsyncadd [#allocation5], 4294967168 }
  0x35   :  { %620 = dma.done.wait [#allocation8], 2048  }
  0x36   :  { %621 = vsyncadd [#allocation8], 4294965248  ;;  %v629_v0 = vmov 0.0   ;;  %vm630_vm0 = vmmov 0   ;;  %v505_v1 = vld [vmem:[#allocation7] sm:$0xff]   ;;  %v506_v2 = vld [vmem:[#allocation7 + $0x8] sm:$0xff]   ;;  %v239_v18 = vlaneseq }
  0x37   :  { %454 = vmatprep.subr.bf16.mxu0 %v629_v0  ;;  %470 = vmatprep.mubr.msk.bf16.mxu0 %vm630_vm0, %v629_v0  ;;  %v507_v3 = vld [vmem:[#allocation7 + $0x10] sm:$0xff]   ;;  %v508_v4 = vld [vmem:[#allocation7 + $0x18] sm:$0xff]   ;;  %v509_v5 = vld [vmem:[#allocation7 + $0x20] sm:$0xff]   ;;  %s253_s12 = smul.u32 2654435761, %s759_s0  ;;  %s632_s13 = smov [#allocation10]  }
  0x38   :  { %474 = vmatprep.subr.bf16.mxu1 %v629_v0  ;;  %490 = vmatprep.mubr.msk.bf16.mxu1 %vm630_vm0, %v629_v0  ;;  %v510_v6 = vld [vmem:[#allocation7 + $0x28] sm:$0xff]   ;;  %v511_v7 = vld [vmem:[#allocation7 + $0x30] sm:$0xff]   ;;  %v512_v8 = vld [vmem:[#allocation7 + $0x38] sm:$0xff]   ;;  %v240_v19 = vshrl.u32 %v239_v18, 7  ;;  %v247_v26 = vand.u32 127, %v239_v18  ;;  %s401_s14 = sshll.u32 %s632_s13, 4  ;;  %s402_s14 = int_to_ptr.vmem [resolvable:$true] %s401_s14 }
  0x39   :  { %455 = vmatpush3.bf16.msra.mxu0 %v505_v1  ;;  %v513_v9 = vld [vmem:[#allocation4] sm:$0xff]   ;;  %v514_v10 = vld [vmem:[#allocation9] sm:$0xff]   ;;  %v515_v11 = vld [vmem:[#allocation9 + $0x8] sm:$0xff]   ;;  %v254_v38 = vstv %s253_s12  ;;  %s596_s15 = scalar_lea.vmem %s402_s14, 256  ;;  %p601_p11 = scmp.lt.s32.totalorder %s402_s14, %s402_s14 }
  0x3a   :  { %456 = vmatprep.subr.bf16.mxu0 %v629_v0  ;;  %475 = vmatpush3.bf16.msra.mxu1 %v514_v10  ;;  %v516_v12 = vld [vmem:[#allocation9 + $0x10] sm:$0xff]   ;;  %v517_v13 = vld [vmem:[#allocation9 + $0x18] sm:$0xff]   ;;  %v518_v14 = vld [vmem:[#allocation9 + $0x20] sm:$0xff]   ;;  %v241_v21 = vadd.s32 8, %v240_v19  ;;  %v248_v27 = vmul.u32 128, %v240_v19  ;;  %p597_p10 = scmp.ne.s32.totalorder %s402_s14, %s596_s15  ;;  %p602_p12 = scmp.lt.s32.totalorder %s596_s15, %s596_s15 }
  0x3b   :  { %476 = vmatprep.subr.bf16.mxu1 %v629_v0  ;;  %v519_v15 = vld [vmem:[#allocation9 + $0x28] sm:$0xff]   ;;  %v520_v16 = vld [vmem:[#allocation9 + $0x30] sm:$0xff]   ;;  %v521_v17 = vld [vmem:[#allocation9 + $0x38] sm:$0xff]  }
  0x3c   :  { %v414_v20 = vld [vmem:[%s762_s3] ss:$0 sm:$0xff]  ;;  %v249_v31 = vmul.u32 128, %v241_v21  ;;  %v250_v34 = vadd.s32 %v248_v27, %v247_v26  ;;  %p603_p13 = por %p602_p12, %p601_p11 }
  0x3d   :  { %457 = vmatpush3.bf16.msra.mxu0 %v506_v2 }
  0x3e   :  { %458 = vmatprep.subr.bf16.mxu0 %v629_v0  ;;  %477 = vmatpush3.bf16.msra.mxu1 %v515_v11  ;;  %v251_v37 = vadd.s32 %v249_v31, %v247_v26  ;;  %v255_v41 = vadd.s32 %v254_v38, %v250_v34  ;;  %v631_v26 = vmov -1.0   ;;  %p604_p0 = pnand %p603_p13, %p597_p10 }
  0x3f   :  { %478 = vmatprep.subr.bf16.mxu1 %v629_v0 }
  0x40   :  { %v256_v43 = vadd.s32 %v254_v38, %v251_v37  ;;  %v257_v44 = vshrl.u32 %v255_v41, 16 }
  0x41   :  { %459 = vmatpush3.bf16.msra.mxu0 %v507_v3 }
  0x42   :  { %460 = vmatprep.subr.bf16.mxu0 %v629_v0  ;;  %479 = vmatpush3.bf16.msra.mxu1 %v516_v12  ;;  %v258_v45 = vshrl.u32 %v256_v43, 16  ;;  %v259_v47 = vxor.u32 %v257_v44, %v255_v41 }
  0x43   :  { %480 = vmatprep.subr.bf16.mxu1 %v629_v0 }
  0x44   :  { %v260_v48 = vxor.u32 %v258_v45, %v256_v43  ;;  %v261_v53 = vmul.u32 2245976595, %v259_v47 }
  0x45   :  { %461 = vmatpush3.bf16.msra.mxu0 %v508_v4 }
  0x46   :  { %462 = vmatprep.subr.bf16.mxu0 %v629_v0  ;;  %481 = vmatpush3.bf16.msra.mxu1 %v517_v13  ;;  %v262_v54 = vmul.u32 2245976595, %v260_v48  ;;  %v263_v61 = vshrl.u32 %v261_v53, 13 }
  0x47   :  { %482 = vmatprep.subr.bf16.mxu1 %v629_v0 }
  0x48   :  { %v264_v63 = vshrl.u32 %v262_v54, 13  ;;  %v265_v4 = vxor.u32 %v263_v61, %v261_v53 }
  0x49   :  { %463 = vmatpush3.bf16.msra.mxu0 %v509_v5 }
  0x4a   :  { %464 = vmatprep.subr.bf16.mxu0 %v629_v0  ;;  %483 = vmatpush3.bf16.msra.mxu1 %v518_v14  ;;  %v267_v10 = vmul.u32 3266489909, %v265_v4 }
  0x4b   :  { %484 = vmatprep.subr.bf16.mxu1 %v629_v0 }
  0x4d   :  { %465 = vmatpush3.bf16.msra.mxu0 %v510_v6  ;;  %v266_v6 = vxor.u32 %v264_v63, %v262_v54 }
  0x4e   :  { %466 = vmatprep.subr.bf16.mxu0 %v629_v0  ;;  %485 = vmatpush3.bf16.msra.mxu1 %v519_v15 }
  0x4f   :  { %486 = vmatprep.subr.bf16.mxu1 %v629_v0  ;;  %v268_v12 = vmul.u32 3266489909, %v266_v6 }
  0x51   :  { %467 = vmatpush3.bf16.msra.mxu0 %v511_v7  ;;  %v270_v19 = vshrl.u32 %v268_v12, 16 }
  0x52   :  { %468 = vmatprep.subr.bf16.mxu0 %v629_v0  ;;  %487 = vmatpush3.bf16.msra.mxu1 %v520_v16  ;;  %v269_v16 = vshrl.u32 %v267_v10, 16 }
  0x53   :  { %488 = vmatprep.subr.bf16.mxu1 %v629_v0  ;;  %v272_v31 = vxor.u32 %v270_v19, %v268_v12 }
  0x55   :  { %469 = vmatpush3.bf16.msra.mxu0 %v512_v8 }
  0x56   :  { %489 = vmatpush3.bf16.msra.mxu1 %v521_v17 }
  0x58   :  { %471 = vmatmul.mubr.bf16.vlgmr.msra.gmra.mrb[0].mxu0 %v513_v9 }
 0x12b   :  { %v178_v22 = vpop.f32.mrb[0].mxu0 }
 0x12c   :  { %v725_v23 = vadd.f32 %v414_v20, %v178_v22  ;;  %v472_v24 = vpop.f32.mrb[1].mxu0 }
 0x12d   :  { %v181_v25 = vpop.f32.mrb[2].mxu0 }
 0x12e   :  { %v728_v28 = vmul.f32 0.70710677, %v725_v23  ;;  %v730_v29 = vadd.f32 %v414_v20, %v181_v25  ;;  %v473_v30 = vpop.f32.mrb[3].mxu0  ;;  %v271_v25 = vxor.u32 %v269_v16, %v267_v10  ;;  %v185_v37 = vmul.f32 0.5, %v725_v23 }
 0x130   :  { %v193_v32 = vand.u32 2147483647, %v728_v28  ;;  %v737_v33 = vmul.f32 0.70710677, %v730_v29  ;;  %vm189_vm1 = vcmp.ge.f32.partialorder %v728_v28, 0.0  ;;  %v186_v41 = vmul.f32 0.5, %v730_v29 }
 0x131   :  { %v191_v27 = vsel %vm189_vm1, 1.0, %v631_v26  ;;  %v274_v28 = vand.u32 16777215, %v272_v31 }
 0x132   :  { %v195_v35 = vmul.f32 0.3275911, %v193_v32  ;;  %v194_v36 = vand.u32 2147483647, %v737_v33  ;;  %v221_v46 = vsub.f32 0.0, %v193_v32  ;;  %vm190_vm2 = vcmp.ge.f32.partialorder %v737_v33, 0.0 }
 0x133   :  { %vm276_vm4 = vcmp.ge.s32.totalorder %v274_v28, 3355443 }
 0x134   :  { %v197_v39 = vadd.f32 1.0, %v195_v35  ;;  %v196_v40 = vmul.f32 0.3275911, %v194_v36  ;;  %v222_v49 = vsub.f32 0.0, %v194_v36  ;;  %v223_v51 = vmul.f32 %v221_v46, %v193_v32  ;;  %v424_v46 = vld [vmem:[%s764_s5] ss:$0 sm:$0xff] }
 0x136   :  { %522 = vrcp.f32 %v197_v39  ;;  %v198_v42 = vadd.f32 1.0, %v196_v40  ;;  %v224_v57 = vmul.f32 %v222_v49, %v194_v36  ;;  %v225_v58 = vmul.f32 1.442695, %v223_v51 }
 0x137   :  { %v192_v36 = vsel %vm190_vm2, 1.0, %v631_v26  ;;  %v273_v39 = vand.u32 16777215, %v271_v25 }
 0x138   :  { %524 = vrcp.f32 %v198_v42  ;;  %v227_v1 = vmul.f32 1.442695, %v224_v57 }
 0x139   :  { %526 = vpow2.f32 %v225_v58  ;;  %vm275_vm3 = vcmp.ge.s32.totalorder %v273_v39, 3355443 }
 0x13a   :  { %528 = vpow2.f32 %v227_v1  ;;  %vm433_vm5 = vmpackc.low %vm276_vm4, %vm275_vm3 }
 0x140   :  { %v523_v50 = vpop.eup %522 }
 0x141   :  { %v203_v52 = vmul.f32 1.0614054, %v523_v50 }
 0x142   :  { %v525_v55 = vpop.eup %524 }
 0x143   :  { %v205_v56 = vadd.f32 -1.4531521, %v203_v52  ;;  %v204_v59 = vmul.f32 1.0614054, %v525_v55  ;;  %v527_v17 = vpop.eup %526 }
 0x144   :  { %v529_v22 = vpop.eup %528 }
 0x145   :  { %v207_v60 = vmul.f32 %v523_v50, %v205_v56  ;;  %v206_v62 = vadd.f32 -1.4531521, %v204_v59 }
 0x147   :  { %v209_v0 = vadd.f32 1.4214138, %v207_v60  ;;  %v208_v2 = vmul.f32 %v525_v55, %v206_v62 }
 0x149   :  { %v211_v3 = vmul.f32 %v523_v50, %v209_v0  ;;  %v210_v5 = vadd.f32 1.4214138, %v208_v2 }
 0x14b   :  { %v213_v7 = vadd.f32 -0.28449672, %v211_v3  ;;  %v212_v8 = vmul.f32 %v525_v55, %v210_v5 }
 0x14d   :  { %v215_v9 = vmul.f32 %v523_v50, %v213_v7  ;;  %v214_v11 = vadd.f32 -0.28449672, %v212_v8 }
 0x14f   :  { %v217_v13 = vadd.f32 0.2548296, %v215_v9  ;;  %v216_v14 = vmul.f32 %v525_v55, %v214_v11 }
 0x151   :  { %v219_v15 = vmul.f32 %v523_v50, %v217_v13  ;;  %v218_v18 = vadd.f32 0.2548296, %v216_v14 }
 0x153   :  { %v229_v20 = vmul.f32 %v527_v17, %v219_v15  ;;  %v220_v21 = vmul.f32 %v525_v55, %v218_v18 }
 0x155   :  { %v231_v24 = vsub.f32 1.0, %v229_v20  ;;  %v230_v30 = vmul.f32 %v529_v22, %v220_v21 }
 0x157   :  { %v233_v32 = vmul.f32 %v231_v24, %v191_v27  ;;  %v232_v34 = vsub.f32 1.0, %v230_v30 }
 0x159   :  { %v235_v35 = vadd.f32 1.0, %v233_v32  ;;  %v234_v38 = vmul.f32 %v232_v34, %v192_v36 }
 0x15b   :  { %v237_v40 = vmul.f32 %v235_v35, %v185_v37  ;;  %v236_v42 = vadd.f32 1.0, %v234_v38 }
 0x15d   :  { %v238_v43 = vmul.f32 %v236_v42, %v186_v41  ;;  %v277_v44 = vmul.f32 1.25, %v237_v40 }
 0x15f   :  { %v278_v33 = vmul.f32 1.25, %v238_v43 }
 0x161   :  { %v434_v45 = vpack.c.bf16 %v278_v33, %v277_v44 }
 0x163   :  { %491 = vmatmul.mubr.msk.bf16.vlgmr.msra.gmra.mrb[0].mxu1 %vm433_vm5, %v434_v45 }
 0x236   :  { %v387_v23 = vpop.f32.mrb[0].mxu1 }
 0x237   :  { %v388_v47 = vadd.f32 %v424_v46, %v387_v23  ;;  %v492_v48 = vpop.f32.mrb[1].mxu1 }
 0x238   :  { %v390_v49 = vpop.f32.mrb[2].mxu1 }
 0x239   :  { %394 = vst [vmem:[#allocation10] sm:$0xff] %v388_v47  ;;  %v391_v29 = vadd.f32 %v424_v46, %v390_v49  ;;  %v493_v50 = vpop.f32.mrb[3].mxu1 }
 0x23b   :  { %395 = vst [vmem:[#allocation10 + $0x8] sm:$0xff] %v391_v29 }
 0x23c   :  { %607 = shalt.err (!%p604_p0)
}
 0x23d   :  { %s608_s17 = scalar_lea.hbm %s765_s6, 256 }
 0x23e   :  { %p609_p1 = scmp.ne.s32.totalorder %s765_s6, %s608_s17  ;;  %p612_p2 = scmp.lt.u32.totalorder %s608_s17, %s765_s6 }
 0x240   :  { %p614_p3 = pnand %p612_p2, %p609_p1 }
 0x242   :  { %617 = shalt.err (!%p614_p3)
}
 0x243   :  { %s633_s21 = smov 128   ;;  %s634_s22 = smov 8  }
 0x244   :  { %407 = dma.vmem_to_hbm [thread:$0]  %s402_s14, 256, %s765_s6, [#allocation6], %s633_s21, %s633_s21, %s634_s22  }
 0x245   :  { %622 = dma.done.wait [#allocation6], 256  }
 0x246   :  { %623 = vsyncadd [#allocation6], 4294967040 }
 0x247   :  { %411 = vsyncpa [#allocation5], 1 }
 0x248   :  { %412 = vsyncpa [#allocation8], 1 }
 0x249   :  { %413 = vsyncpa [#allocation6], 1 }

</bundles_post_ra>
